<compile_context>
chip_gen: v7x
topology: tpu7x:2x2x1
jax: 0.10.0
libtpu: 0.0.40
codegen_flags: <defaults>
</compile_context>

<pallas_src>
import functools

import jax
import jax.numpy as jnp
from jax import lax
from jax.experimental import pallas as pl
from jax.experimental.pallas import tpu as pltpu


def _round_up(x: int, m: int) -> int:
    return ((x + m - 1) // m) * m


def _sublane(dtype) -> int:
    # Minimum second-minor granularity: 8 rows for 4-byte, 16 for 2-byte,
    # 32 for 1-byte dtypes (sub-32-bit packs along sublanes).
    itemsize = jnp.dtype(dtype).itemsize
    return max(8, 32 // max(itemsize, 1))


def _argmax_kernel(emission_ref, idx_ref, *, num_classes: int):
    """Row-wise argmax over the class (lane) axis; first occurrence wins ties."""
    e = emission_ref[...].astype(jnp.float32)                   # (T_TILE, C)
    m = jnp.max(e, axis=-1, keepdims=True)                      # (T_TILE, 1)
    # (1, C) lane-row iota; broadcasting covers the sublane dim, so no
    # tile-sized int32 iota temporary is materialized.
    col = lax.broadcasted_iota(jnp.int32, (1, num_classes), 1)
    idx = jnp.min(jnp.where(e == m, col, num_classes), axis=-1, keepdims=True)
    # NaN guard: a NaN row has e == m nowhere -> idx == num_classes; clamp so
    # the host never indexes labels out of range.  (torch.argmax would return
    # the NaN position -- documented divergence.)
    idx_ref[...] = jnp.minimum(idx, num_classes - 1).astype(jnp.int32)


def _pick_t_tile(T: int, C: int, dtype) -> int:
    sub = _sublane(dtype)
    # Physical VMEM bytes per block row: lanes padded to 128, intermediates 4 B.
    row_bytes = _round_up(C, 128) * 4
    budget = 4 * 1024 * 1024                      # ~4 MiB input block
    rows = max(sub, (budget // row_bytes) // sub * sub)
    # Keep >= 8 grid steps when there is enough work so v7x's two TensorCores
    # each get several evenly balanced tiles and the DMA pipeline stays full.
    min_steps = 8
    if T >= min_steps * sub:
        rows = min(rows, _round_up(pl.cdiv(T, min_steps), sub))
    rows = min(rows, _round_up(T, sub))           # never over-tile tiny inputs
    return max(rows, sub)


@functools.partial(jax.jit, static_argnames=("t_tile",))
def greedy_ctc_indices(emission: jax.Array, t_tile: int | None = None) -> jax.Array:
    """argmax(emission, axis=-1) via a time-tiled Pallas TPU kernel.

    emission: (T, C) float array (f32 or bf16).  Returns (T,) int32 indices.
    """
    T, C = emission.shape
    sub = _sublane(emission.dtype)
    if t_tile is None:
        t_tile = _pick_t_tile(T, C, emission.dtype)
    t_tile = _round_up(max(int(t_tile), sub), sub)

    # VMEM: 2x double-buffered input block (input dtype) + ~4 tile-sized
    # f32/i32 intermediates + slack; clamp to [32 MiB, 60 MiB] so the limit is
    # valid on every generation (<= v7x's 64 MiB-per-TC physical VMEM).
    lanes = _round_up(C, 128)
    in_block = t_tile * lanes * emission.dtype.itemsize
    work_block = t_tile * lanes * 4
    vmem_bytes = 2 * in_block + 4 * work_block + (1 << 20)
    vmem_limit = int(min(max(vmem_bytes, 32 * 1024 * 1024), 60 * 1024 * 1024))

    kernel = functools.partial(_argmax_kernel, num_classes=C)
    idx = pl.pallas_call(
        kernel,
        out_shape=jax.ShapeDtypeStruct((T, 1), jnp.int32),
        grid=(pl.cdiv(T, t_tile),),
        # Last block dim == full class width C (legal: equals the array dim),
        # so the raw (T, C) emission is read with no extra padding pass in HBM.
        in_specs=[pl.BlockSpec((t_tile, C), lambda i: (i, 0))],
        out_specs=pl.BlockSpec((t_tile, 1), lambda i: (i, 0)),
        compiler_params=pltpu.CompilerParams(
            dimension_semantics=("parallel",),
            vmem_limit_bytes=vmem_limit,
        ),
    )(emission)
    return idx[:, 0]


class GreedyCTCDecoder:
    """JAX/Pallas port of the PyTorch GreedyCTCDecoder."""

    def __init__(self, labels, blank: int = 0):
        self.labels = labels
        self.blank = blank

    def __call__(self, emission: jax.Array, t_tile: int | None = None) -> str:
        idx = greedy_ctc_indices(emission, t_tile=t_tile)
        jax.block_until_ready(idx)
        idx_h = jax.device_get(idx).tolist()
        # TODO(synk): unique_consecutive + blank drop + string join are
        # variable-length host-side glue with no clean Pallas equivalent.
        out, prev = [], None
        for i in idx_h:
            if i != prev and i != self.blank:
                out.append(self.labels[i])
            prev = i
        return "".join(out)


if __name__ == "__main__":
    # Small deterministic example: T=200 frames, C=29-class CTC vocabulary
    # (blank + letters), in the spirit of wav2vec2.
    T, C = 200, 29
    key = jax.random.PRNGKey(0)
    emission = jax.nn.log_softmax(
        jax.random.normal(key, (T, C), dtype=jnp.float32), axis=-1
    )
    labels = ["-"] + [chr(ord("a") + (i % 26)) for i in range(C - 1)]

    decoder = GreedyCTCDecoder(labels, blank=0)
    # Force a small tile so the multi-tile "parallel" time axis and the
    # partial final block (200 % 64 != 0) paths are both exercised.
    transcript = decoder(emission, t_tile=64)

    # Host reference of the full forward pass.
    ref_idx = jax.device_get(jnp.argmax(emission, axis=-1)).tolist()
    ref, prev = [], None
    for i in ref_idx:
        if i != prev and i != 0:
            ref.append(labels[i])
        prev = i
    ref_transcript = "".join(ref)

    assert transcript == ref_transcript, (transcript, ref_transcript)
    print("KERNEL_OK")
</pallas_src>

<mosaic_0001>
module attributes {stable_mosaic.version = 11 : i64} {
  func.func @_argmax_kernel(%arg0: i32, %arg1: memref<64x29xf32, #tpu.memory_space<vmem>>, %arg2: memref<64x1xi32, #tpu.memory_space<vmem>>) attributes {dimension_semantics = [#tpu.dimension_semantics<parallel>], iteration_bounds = array<i64: 4>, scalar_prefetch = 0 : i64, scratch_operands = 0 : i64, tpu.core_type = #tpu.core_type<tc>, window_params = [{transform_indices = @transform_0, window_bounds = array<i64: 64, 29>}, {transform_indices = @transform_1, window_bounds = array<i64: 64, 1>}]} {
    %c0 = arith.constant 0 : index
    %c0_0 = arith.constant 0 : index
    %0 = vector.load %arg1[%c0, %c0_0] : memref<64x29xf32, #tpu.memory_space<vmem>>, vector<64x29xf32>
    %cst = arith.constant dense<0xFF800000> : vector<64xf32>
    %1 = vector.multi_reduction <maximumf>, %0, %cst [1] : vector<64x29xf32> to vector<64xf32>
    %2 = vector.shape_cast %1 : vector<64xf32> to vector<64x1xf32>
    %3 = tpu.iota {dimensions = array<i32: 1>} : vector<1x29xi32>
    %4 = vector.broadcast %2 : vector<64x1xf32> to vector<64x29xf32>
    %5 = arith.cmpf oeq, %0, %4 : vector<64x29xf32>
    %c29_i32 = arith.constant 29 : i32
    %6 = vector.shape_cast %3 : vector<1x29xi32> to vector<1x29xi32>
    %7 = vector.broadcast %6 : vector<1x29xi32> to vector<64x29xi32>
    %8 = vector.broadcast %c29_i32 : i32 to vector<64x29xi32>
    %9 = arith.select %5, %7, %8 : vector<64x29xi1>, vector<64x29xi32>
    %cst_1 = arith.constant dense<2147483647> : vector<64xi32>
    %10 = vector.multi_reduction <minsi>, %9, %cst_1 [1] : vector<64x29xi32> to vector<64xi32>
    %11 = vector.shape_cast %10 : vector<64xi32> to vector<64x1xi32>
    %c28_i32 = arith.constant 28 : i32
    %12 = vector.broadcast %c28_i32 : i32 to vector<64x1xi32>
    %13 = arith.minsi %11, %12 : vector<64x1xi32>
    %c0_2 = arith.constant 0 : index
    %c0_3 = arith.constant 0 : index
    %14 = vector.load %arg2[%c0_2, %c0_3] : memref<64x1xi32, #tpu.memory_space<vmem>>, vector<64x1xi32>
    tpu.vector_store %arg2[%c0_2, %c0_3], %13 {strides = array<i32>} : memref<64x1xi32, #tpu.memory_space<vmem>>, vector<64x1xi32>,
    return
  }
  func.func @transform_0(%arg0: i32) -> (i32, i32) {
    %c0_i32 = arith.constant 0 : i32
    %c0_i32_0 = arith.constant 0 : i32
    return %arg0, %c0_i32 : i32, i32
  }
  func.func @transform_1(%arg0: i32) -> (i32, i32) {
    %c0_i32 = arith.constant 0 : i32
    %c0_i32_0 = arith.constant 0 : i32
    return %arg0, %c0_i32 : i32, i32
  }
}

</mosaic_0001>

<bundles_post_ra>
// kernel: greedy_ctc_indices.1
= control target key start
LH: loop header
LB: loop body
LE: loop exit
PB: predicated region body
PF: predicated region fallthrough
CT: control target
= control target key end

     0   :  { %s790_s6 = smov 0   ;;  %s792_s7 = smov 0   ;;  %s923_s0 = inlined_call_operand.vmem [shape: f32[200,29], index: 0, kind: input, shape index: {}]   ;;  %s924_s1 = inlined_call_operand.vmem [shape: s32[200,1], index: 1, kind: output, shape index: {}]  }
   0x1   :  { %s794_s8 = smov 0  }
   0x2 LB: > { %s803_s9 = sadd.s32 4294967295, %s746_s8   ;;  %s805_s10 = sadd.s32 1, %s746_s8   ;;  %s746_s8 = sphi %s794_s8, %s931_s8   ;;  %s742_s7 = sphi %s792_s7, %s930_s7   ;;  %s738_s6 = sphi %s790_s6, %s929_s6  }
   0x3   : > { %s41_s11 = ssub.s32 %s746_s8, %s805_s10  ;;  %s44_s12 = sadd.s32 1, %s742_s7 }
   0x4   : > { %p42_p0 = scmp.eq.s32.totalorder %s41_s11, 0  ;;  %p54_p1 = scmp.ne.s32.totalorder %s742_s7, %s738_s6 }
   0x5   : > { %p55_p2 = scmp.eq.s32.totalorder %s803_s9, 3  ;;  %p580_p3 = scmp.ge.s32.totalorder %s746_s8, 1 }
   0x6   : > { %s813_s13 = scalar_select %p42_p0, %s742_s7, %s44_s12  }
   0x7   : > { %p815_p4 = por %p55_p2, %p54_p1  ;;  %p96_p5 = scmp.lt.s32.totalorder %s746_s8, 5 }
   0x9   : > { %p97_p6 = pnand %p580_p3, %p96_p5 }
   0xa   : > { %s820_s15 = sshll.u32 (!%p97_p6), %s803_s9, 3  ;;  %vm146_vm0 = vcmask (!%p97_p6), 236544   ;;  %v171_v16 = vlaneseq (!%p97_p6)  ;;  %s116_s21 = sand.u32 (!%p97_p6), 1, %s738_s6  }
   0xb   : > { %100 = sbr.rel (%p97_p6) target bundleno = 531 (0x213), region = 24  ;;  %p124_p7 = scmp.lt.s32.totalorder (!%p97_p6), %s820_s15, 24 }
   0xc   : > { %v172_v17 = vand.u32 (!%p97_p6), 127, %v171_v16  ;;  %s581_s22 = sshll.u32 (!%p97_p6), %s116_s21, 6 }
   0xd   : > { %s844_s23 = scalar_lea.vmem (!%p97_p6), [#allocation2], %s581_s22  }
  0x12   : > { %s125_s16 = scalar_select %p124_p7, %s820_s15, 24 }
  0x13   : > { %s342_s24 = ssub.s32 (%p815_p4), 25, %s820_s15  ;;  %s601_s25 = sshll.u32 (%p815_p4), %s803_s9, 6 }
  0x14   : > { %s583_s17 = sshll.u32 %s125_s16, 3  ;;  %p343_p8 = scmp.lt.s32.totalorder (%p815_p4), %s342_s24, 8 }
  0x15   : > { %s127_s20 = scalar_lea.vmem %s923_s0, %s583_s17  ;;  %s869_s28 = scalar_lea.vmem (%p815_p4), %s924_s1, %s601_s25  }
  0x16   : > { %v138_v0 = vld [vmem:[%s127_s20] sm:$0xff]  ;;  %v140_v1 = vld [vmem:[%s127_s20 + $0x10] sm:$0xff]  ;;  %v139_v2 = vld [vmem:[%s127_s20 + $0x8] sm:$0xff] }
  0x17   : > { %v147_v3 = vsel %vm146_vm0, %v138_v0, -inf  ;;  %v153_v4 = vsel %vm146_vm0, %v140_v1, -inf  ;;  %v141_v5 = vld [vmem:[%s127_s20 + $0x18] sm:$0xff]  ;;  %v150_v6 = vsel %vm146_vm0, %v139_v2, -inf  ;;  %v142_v8 = vld [vmem:[%s127_s20 + $0x20] sm:$0xff]  ;;  %v143_v9 = vld [vmem:[%s127_s20 + $0x28] sm:$0xff] }
  0x18   : > { %148 = vmax.xlane.f32.xlu0 %v147_v3  ;;  %154 = vmax.xlane.f32.xlu1 %v153_v4  ;;  %v156_v7 = vsel %vm146_vm0, %v141_v5, -inf  ;;  %v159_v10 = vsel %vm146_vm0, %v142_v8, -inf  ;;  %v162_v11 = vsel %vm146_vm0, %v143_v9, -inf  ;;  %v144_v12 = vld [vmem:[%s127_s20 + $0x30] sm:$0xff]  ;;  %v145_v13 = vld [vmem:[%s127_s20 + $0x38] sm:$0xff] }
  0x19   : > { %v165_v14 = vsel %vm146_vm0, %v144_v12, -inf  ;;  %v168_v15 = vsel %vm146_vm0, %v145_v13, -inf }
  0x1c   : > { %151 = vmax.xlane.f32.xlu0 %v150_v6  ;;  %157 = vmax.xlane.f32.xlu1 %v156_v7 }
  0x20   : > { %160 = vmax.xlane.f32.xlu0 %v159_v10  ;;  %163 = vmax.xlane.f32.xlu1 %v162_v11 }
  0x24   : > { %166 = vmax.xlane.f32.xlu0 %v165_v14  ;;  %169 = vmax.xlane.f32.xlu1 %v168_v15 }
  0xa5   : > { %v149_v18 = vpop.xlane.xlu0 %148  ;;  %v155_v19 = vpop.xlane.xlu1 %154 }
  0xa6   : > { %vm173_vm1 = vcmp.eq.f32.partialorder %v138_v0, %v149_v18  ;;  %vm175_vm2 = vcmp.eq.f32.partialorder %v140_v1, %v155_v19 }
  0xa7   : > { %v181_v20 = vsel %vm173_vm1, %v172_v17, 29  ;;  %v183_v21 = vsel %vm175_vm2, %v172_v17, 29  ;;  %vm325_vm1 = vcmask 7168  }
  0xa8   : > { %v189_v22 = vsel %vm146_vm0, %v181_v20, 2147483647  ;;  %v219_v23 = vsel %vm146_vm0, %v183_v21, 2147483647 }
  0xa9   : > { %v152_v24 = vpop.xlane.xlu0 %151  ;;  %v158_v25 = vpop.xlane.xlu1 %157  ;;  %v191_v26 = vshra.s32 %v189_v22, 16  ;;  %v221_v27 = vshra.s32 %v219_v23, 16  ;;  %v190_v58 = vand.u32 65535, %v189_v22  ;;  %v220_v62 = vand.u32 65535, %v219_v23 }
  0xaa   : > { %vm174_vm3 = vcmp.eq.f32.partialorder %v139_v2, %v152_v24  ;;  %vm176_vm4 = vcmp.eq.f32.partialorder %v141_v5, %v158_v25 }
  0xab   : > { %v182_v28 = vsel %vm174_vm3, %v172_v17, 29  ;;  %v184_v29 = vsel %vm176_vm4, %v172_v17, 29  ;;  %v193_v30 = vcvt.s32.f32 %v191_v26  ;;  %v223_v35 = vcvt.s32.f32 %v221_v27 }
  0xac   : > { %v204_v31 = vsel %vm146_vm0, %v182_v28, 2147483647  ;;  %v234_v32 = vsel %vm146_vm0, %v184_v29, 2147483647  ;;  %v192_v60 = vcvt.s32.f32 %v190_v58  ;;  %v222_v3 = vcvt.s32.f32 %v220_v62 }
  0xad   : > { %194 = vmin.xlane.f32.xlu0 %v193_v30  ;;  %v161_v33 = vpop.xlane.xlu0 %160  ;;  %v164_v34 = vpop.xlane.xlu1 %163  ;;  %v206_v36 = vshra.s32 %v204_v31, 16  ;;  %v236_v37 = vshra.s32 %v234_v32, 16  ;;  %v205_v61 = vand.u32 65535, %v204_v31  ;;  %v235_v4 = vand.u32 65535, %v234_v32 }
  0xae   : > { %vm177_vm5 = vcmp.eq.f32.partialorder %v142_v8, %v161_v33  ;;  %vm178_vm6 = vcmp.eq.f32.partialorder %v143_v9, %v164_v34 }
  0xaf   : > { %v185_v38 = vsel %vm177_vm5, %v172_v17, 29  ;;  %v186_v39 = vsel %vm178_vm6, %v172_v17, 29  ;;  %v208_v40 = vcvt.s32.f32 %v206_v36  ;;  %v238_v45 = vcvt.s32.f32 %v236_v37 }
  0xb0   : > { %v249_v41 = vsel %vm146_vm0, %v185_v38, 2147483647  ;;  %v264_v42 = vsel %vm146_vm0, %v186_v39, 2147483647  ;;  %v207_v2 = vcvt.s32.f32 %v205_v61  ;;  %v237_v10 = vcvt.s32.f32 %v235_v4 }
  0xb1   : > { %224 = vmin.xlane.f32.xlu0 %v223_v35  ;;  %209 = vmin.xlane.f32.xlu1 %v208_v40  ;;  %v167_v43 = vpop.xlane.xlu0 %166  ;;  %v170_v44 = vpop.xlane.xlu1 %169  ;;  %v251_v46 = vshra.s32 %v249_v41, 16  ;;  %v266_v47 = vshra.s32 %v264_v42, 16  ;;  %v250_v5 = vand.u32 65535, %v249_v41 }
  0xb2   : > { %vm179_vm7 = vcmp.eq.f32.partialorder %v144_v12, %v167_v43  ;;  %vm180_vm8 = vcmp.eq.f32.partialorder %v145_v13, %v170_v44  ;;  %v265_v12 = vand.u32 65535, %v264_v42 }
  0xb3   : > { %v187_v48 = vsel %vm179_vm7, %v172_v17, 29  ;;  %v188_v49 = vsel %vm180_vm8, %v172_v17, 29  ;;  %v253_v50 = vcvt.s32.f32 %v251_v46  ;;  %v268_v53 = vcvt.s32.f32 %v266_v47 }
  0xb4   : > { %v279_v51 = vsel %vm146_vm0, %v187_v48, 2147483647  ;;  %v294_v52 = vsel %vm146_vm0, %v188_v49, 2147483647  ;;  %v252_v11 = vcvt.s32.f32 %v250_v5  ;;  %v267_v18 = vcvt.s32.f32 %v265_v12 }
  0xb5   : > { %239 = vmin.xlane.f32.xlu1 %v238_v45  ;;  %254 = vmin.xlane.f32.xlu0 %v253_v50  ;;  %v281_v54 = vshra.s32 %v279_v51, 16  ;;  %v296_v55 = vshra.s32 %v294_v52, 16  ;;  %v280_v13 = vand.u32 65535, %v279_v51  ;;  %v295_v20 = vand.u32 65535, %v294_v52 }
  0xb7   : > { %v283_v56 = vcvt.s32.f32 %v281_v54  ;;  %v298_v57 = vcvt.s32.f32 %v296_v55  ;;  %v282_v19 = vcvt.s32.f32 %v280_v13  ;;  %v297_v24 = vcvt.s32.f32 %v295_v20 }
  0xb9   : > { %269 = vmin.xlane.f32.xlu1 %v268_v53  ;;  %284 = vmin.xlane.f32.xlu0 %v283_v56 }
  0xbd   : > { %299 = vmin.xlane.f32.xlu1 %v298_v57 }
 0x13a   : > { %v195_v59 = vpop.xlane.xlu0 %194 }
 0x13b   : > { %vm196_vm9 = vcmp.eq.f32.partialorder %v193_v30, %v195_v59  ;;  %v201_v26 = vcvt.f32.s32 %v195_v59 }
 0x13c   : > { %v197_v63 = vsel %vm196_vm9, %v192_v60, inf }
 0x13d   : > { %198 = vmin.xlane.f32.xlu0 %v197_v63  ;;  %v202_v29 = vshll.u32 %v201_v26, 16 }
 0x13e   : > { %v210_v0 = vpop.xlane.xlu1 %209  ;;  %v225_v1 = vpop.xlane.xlu0 %224 }
 0x13f   : > { %vm211_vm10 = vcmp.eq.f32.partialorder %v208_v40, %v210_v0  ;;  %vm226_vm11 = vcmp.eq.f32.partialorder %v223_v35, %v225_v1  ;;  %v216_v27 = vcvt.f32.s32 %v210_v0  ;;  %v231_v30 = vcvt.f32.s32 %v225_v1 }
 0x140   : > { %v212_v6 = vsel %vm211_vm10, %v207_v2, inf  ;;  %v227_v7 = vsel %vm226_vm11, %v222_v3, inf }
 0x141   : > { %213 = vmin.xlane.f32.xlu1 %v212_v6  ;;  %228 = vmin.xlane.f32.xlu0 %v227_v7  ;;  %v217_v33 = vshll.u32 %v216_v27, 16  ;;  %v232_v38 = vshll.u32 %v231_v30, 16 }
 0x142   : > { %v240_v8 = vpop.xlane.xlu1 %239  ;;  %v255_v9 = vpop.xlane.xlu0 %254 }
 0x143   : > { %vm241_vm12 = vcmp.eq.f32.partialorder %v238_v45, %v240_v8  ;;  %vm256_vm13 = vcmp.eq.f32.partialorder %v253_v50, %v255_v9  ;;  %v246_v34 = vcvt.f32.s32 %v240_v8  ;;  %v261_v35 = vcvt.f32.s32 %v255_v9 }
 0x144   : > { %v242_v14 = vsel %vm241_vm12, %v237_v10, inf  ;;  %v257_v15 = vsel %vm256_vm13, %v252_v11, inf }
 0x145   : > { %243 = vmin.xlane.f32.xlu1 %v242_v14  ;;  %258 = vmin.xlane.f32.xlu0 %v257_v15  ;;  %v247_v44 = vshll.u32 %v246_v34, 16  ;;  %v262_v45 = vshll.u32 %v261_v35, 16 }
 0x146   : > { %v270_v16 = vpop.xlane.xlu1 %269  ;;  %v285_v17 = vpop.xlane.xlu0 %284 }
 0x147   : > { %vm271_vm14 = vcmp.eq.f32.partialorder %v268_v53, %v270_v16  ;;  %vm286_vm15 = vcmp.eq.f32.partialorder %v283_v56, %v285_v17  ;;  %v276_v46 = vcvt.f32.s32 %v270_v16  ;;  %v291_v47 = vcvt.f32.s32 %v285_v17 }
 0x148   : > { %v272_v21 = vsel %vm271_vm14, %v267_v18, inf  ;;  %v287_v22 = vsel %vm286_vm15, %v282_v19, inf }
 0x149   : > { %273 = vmin.xlane.f32.xlu1 %v272_v21  ;;  %288 = vmin.xlane.f32.xlu0 %v287_v22  ;;  %v277_v56 = vshll.u32 %v276_v46, 16 }
 0x14a   : > { %v300_v23 = vpop.xlane.xlu1 %299 }
 0x14b   : > { %vm301_vm0 = vcmp.eq.f32.partialorder %v298_v57, %v300_v23  ;;  %v292_v57 = vshll.u32 %v291_v47, 16  ;;  %v306_v58 = vcvt.f32.s32 %v300_v23 }
 0x14c   : > { %v302_v25 = vsel %vm301_vm0, %v297_v24, inf }
 0x14d   : > { %303 = vmin.xlane.f32.xlu1 %v302_v25  ;;  %v307_v4 = vshll.u32 %v306_v58, 16 }
 0x1ca   : > { %v199_v28 = vpop.xlane.xlu0 %198 }
 0x1cb   : > { %v200_v31 = vcvt.f32.s32 %v199_v28 }
 0x1cd   : > { %v203_v32 = vadd.s32 %v202_v29, %v200_v31 }
 0x1ce   : > { %v214_v36 = vpop.xlane.xlu1 %213  ;;  %v229_v37 = vpop.xlane.xlu0 %228 }
 0x1cf   : > { %vm309_vm2 = vcmp.lt.s32.totalorder %v203_v32, 28  ;;  %v215_v39 = vcvt.f32.s32 %v214_v36  ;;  %v230_v40 = vcvt.f32.s32 %v229_v37 }
 0x1d0   : > { %v310_v41 = vsel %vm309_vm2, %v203_v32, 28 }
 0x1d1   : > { %326 = vst.msk [vmem:[%s844_s23] sm:$0xff] %vm325_vm1, %v310_v41  ;;  %v218_v42 = vadd.s32 %v217_v33, %v215_v39  ;;  %v233_v43 = vadd.s32 %v232_v38, %v230_v40 }
 0x1d2   : > { %v244_v48 = vpop.xlane.xlu1 %243  ;;  %v259_v49 = vpop.xlane.xlu0 %258 }
 0x1d3   : > { %vm311_vm3 = vcmp.lt.s32.totalorder %v218_v42, 28  ;;  %vm313_vm4 = vcmp.lt.s32.totalorder %v233_v43, 28  ;;  %v245_v50 = vcvt.f32.s32 %v244_v48  ;;  %v260_v51 = vcvt.f32.s32 %v259_v49 }
 0x1d4   : > { %v312_v52 = vsel %vm311_vm3, %v218_v42, 28  ;;  %v314_v53 = vsel %vm313_vm4, %v233_v43, 28 }
 0x1d5   : > { %327 = vst.msk [vmem:[%s844_s23 + $0x8] sm:$0xff] %vm325_vm1, %v312_v52  ;;  %328 = vst.msk [vmem:[%s844_s23 + $0x10] sm:$0xff] %vm325_vm1, %v314_v53  ;;  %v248_v54 = vadd.s32 %v247_v44, %v245_v50  ;;  %v263_v55 = vadd.s32 %v262_v45, %v260_v51 }
 0x1d6   : > { %v274_v59 = vpop.xlane.xlu1 %273  ;;  %v289_v60 = vpop.xlane.xlu0 %288 }
 0x1d7   : > { %vm315_vm5 = vcmp.lt.s32.totalorder %v248_v54, 28  ;;  %vm317_vm6 = vcmp.lt.s32.totalorder %v263_v55, 28  ;;  %v275_v61 = vcvt.f32.s32 %v274_v59  ;;  %v290_v62 = vcvt.f32.s32 %v289_v60 }
 0x1d8   : > { %v316_v63 = vsel %vm315_vm5, %v248_v54, 28  ;;  %v318_v0 = vsel %vm317_vm6, %v263_v55, 28 }
 0x1d9   : > { %329 = vst.msk [vmem:[%s844_s23 + $0x18] sm:$0xff] %vm325_vm1, %v316_v63  ;;  %330 = vst.msk [vmem:[%s844_s23 + $0x20] sm:$0xff] %vm325_vm1, %v318_v0  ;;  %v278_v1 = vadd.s32 %v277_v56, %v275_v61  ;;  %v293_v2 = vadd.s32 %v292_v57, %v290_v62 }
 0x1da   : > { %v304_v3 = vpop.xlane.xlu1 %303 }
 0x1db   : > { %vm319_vm7 = vcmp.lt.s32.totalorder %v278_v1, 28  ;;  %vm321_vm8 = vcmp.lt.s32.totalorder %v293_v2, 28  ;;  %v305_v5 = vcvt.f32.s32 %v304_v3  ;;  %340 = sbr.rel (!%p815_p4) target bundleno = 531 (0x213), region = 28 }
 0x1dc   : > { %v320_v6 = vsel %vm319_vm7, %v278_v1, 28  ;;  %v322_v7 = vsel %vm321_vm8, %v293_v2, 28 }
 0x1dd   : > { %331 = vst.msk [vmem:[%s844_s23 + $0x28] sm:$0xff] %vm325_vm1, %v320_v6  ;;  %332 = vst.msk [vmem:[%s844_s23 + $0x30] sm:$0xff] %vm325_vm1, %v322_v7  ;;  %v308_v8 = vadd.s32 %v307_v4, %v305_v5 }
 0x1df   : > { %vm323_vm9 = vcmp.lt.s32.totalorder %v308_v8, 28 }
 0x1e0   : > { %v324_v9 = vsel %vm323_vm9, %v308_v8, 28 }
 0x1e1   : > { %333 = vst.msk [vmem:[%s844_s23 + $0x38] sm:$0xff] %vm325_vm1, %v324_v9 }
 0x1e2   : > { %s933_s24 = smov (!%p343_p8, %s342_s24), 8 }
 0x1e3   : > { %s586_s29 = sshll.u32 %s933_s24, 7 }
 0x1e4   : > { %p589_p9 = scmp.eq.s32.totalorder %s586_s29, 0 }
 0x1e5   : > { %s875_s30 = sshrl.u32 (!%p589_p9), %s933_s24, 3 }
 0x1e6   : > { %351 = sbr.rel (%p589_p9) target bundleno = 531 (0x213), region = 32  ;;  %p590_p10 = scmp.le.s32.totalorder (!%p589_p9), %s875_s30, 0 }
 0x1ed   : > { %533 = sbr.rel (%p590_p10) target bundleno = 510 (0x1fe), region = 108  ;;  %s926_s2 = smov (!%p590_p10), %s869_s28 }
 0x1ee   : > { %s927_s3 = smov (!%p590_p10), %s844_s23  ;;  %s884_s4 = smov (!%p590_p10), 0  }
 0x1ef   : > { %s886_s5 = smov (!%p590_p10), 0  }
 0x1f4 LB: >> { %v427_v10 = vld [vmem:[%s754_s3] sm:$0xff]  ;;  %v429_v11 = vld [vmem:[%s754_s3 + $0x8] sm:$0xff]  ;;  %v431_v12 = vld [vmem:[%s754_s3 + $0x10] sm:$0xff]  ;;  %s443_s6 = sadd.s32 1, %s758_s4  ;;  %s421_s5 = sadd.s32 1, %s762_s5   ;;  %s762_s5 = sphi %s886_s5, %s421_s5   ;;  %s758_s4 = sphi %s884_s4, %s928_s4   ;;  %s754_s3 = sphi %s927_s3, %s448_s3   ;;  %s750_s2 = sphi %s926_s2, %s449_s2  }
 0x1f5   : >> { %428 = vst [vmem:[%s750_s2] sm:$0xff] %v427_v10  ;;  %430 = vst [vmem:[%s750_s2 + $0x8] sm:$0xff] %v429_v11  ;;  %v433_v13 = vld [vmem:[%s754_s3 + $0x18] sm:$0xff]  ;;  %v435_v14 = vld [vmem:[%s754_s3 + $0x20] sm:$0xff]  ;;  %p444_p11 = scmp.ge.s32.totalorder %s443_s6, %s875_s30  ;;  %p420_p12 = scmp.ge.s32.totalorder %s421_s5, %s875_s30 }
 0x1f6   : >> { %432 = vst [vmem:[%s750_s2 + $0x10] sm:$0xff] %v431_v12  ;;  %v437_v15 = vld [vmem:[%s754_s3 + $0x28] sm:$0xff]  ;;  %434 = vst [vmem:[%s750_s2 + $0x18] sm:$0xff] %v433_v13  ;;  %v439_v16 = vld [vmem:[%s754_s3 + $0x30] sm:$0xff] }
 0x1f7   : >> { %436 = vst [vmem:[%s750_s2 + $0x20] sm:$0xff] %v435_v14  ;;  %438 = vst [vmem:[%s750_s2 + $0x28] sm:$0xff] %v437_v15  ;;  %v441_v17 = vld [vmem:[%s754_s3 + $0x38] sm:$0xff]  ;;  %s935_s6 = smov (%p444_p11, %s443_s6), 0  ;;  %423 = sbr.rel (!%p420_p12) target bundleno = 500 (0x1f4), region = 114 }
 0x1f8   : >> { %440 = vst [vmem:[%s750_s2 + $0x30] sm:$0xff] %v439_v16  ;;  %442 = vst [vmem:[%s750_s2 + $0x38] sm:$0xff] %v441_v17  ;;  %s591_s8 = sshll.u32 %s935_s6, 6  ;;  %s928_s4 = smov %s935_s6 }
 0x1f9   : >> { %s448_s3 = scalar_lea.vmem %s844_s23, %s591_s8 [#allocation2]   ;;  %s449_s2 = scalar_lea.vmem %s869_s28, %s591_s8  }
 0x1fe PF: > { %s905_s9 = sand.u32 7, %s933_s24   ;;  %s602_s11 = sshll.u32 %s875_s30, 6 }
 0x1ff   : > { %s454_s12 = scalar_lea.vmem %s844_s23, %s602_s11 [#allocation2]   ;;  %s456_s14 = scalar_lea.vmem %s869_s28, %s602_s11  }
 0x200   : > { %p596_p13 = scmp.le.s32.totalorder %s905_s9, 0 }
 0x201   : > { %s764_s15 = smov (!%p596_p13), %s456_s14   ;;  %s768_s16 = smov (!%p596_p13), %s454_s12  }
 0x202   : > { %547 = sbr.rel (%p596_p13) target bundleno = 531 (0x213), region = 119  ;;  %s772_s17 = smov (!%p596_p13), 0  }
 0x203   : > { %s776_s18 = smov (!%p596_p13), 0  }
 0x209 LB: >> { %v466_v18 = vld [vmem:[%s770_s16] sm:$0xff]  ;;  %s468_s19 = sadd.s32 1, %s774_s17  ;;  %s460_s18 = sadd.s32 1, %s778_s18   ;;  %s778_s18 = sphi %s776_s18, %s460_s18   ;;  %s774_s17 = sphi %s772_s17, %s773_s17   ;;  %s770_s16 = sphi %s768_s16, %s473_s16   ;;  %s766_s15 = sphi %s764_s15, %s474_s15  }
 0x20a   : >> { %467 = vst [vmem:[%s766_s15] sm:$0xff] %v466_v18  ;;  %p469_p0 = scmp.ge.s32.totalorder %s468_s19, %s905_s9  ;;  %p459_p1 = scmp.ge.s32.totalorder %s460_s18, %s905_s9 }
 0x20c   : >> { %s937_s19 = smov (%p469_p0, %s468_s19), 0  ;;  %462 = sbr.rel (!%p459_p1) target bundleno = 521 (0x209), region = 125 }
 0x20d   : >> { %s597_s20 = sshll.u32 %s937_s19, 3  ;;  %s773_s17 = smov %s937_s19  }
 0x20e   : >> { %s473_s16 = scalar_lea.vmem %s454_s12, %s597_s20 [#allocation2]   ;;  %s474_s15 = scalar_lea.vmem %s456_s14, %s597_s20  }
 0x213 PF: > { %p8_p2 = scmp.ge.s32.totalorder %s805_s10, 6   ;;  %s929_s6 = smov %s742_s7 }
 0x214   : > { %s930_s7 = smov %s813_s13  ;;  %s931_s8 = smov %s805_s10 }
 0x215   :  { %10 = sbr.rel (!%p8_p2) target bundleno = 2 (0x2), region = 136 }

</bundles_post_ra>
